<compile_context>
chip_gen: v5e
topology: v5e:2x2
jax: 0.10.0
libtpu: 0.0.40
codegen_flags: <defaults>
</compile_context>

<pallas_src>
import math

import jax
import jax.numpy as jnp
from jax.experimental import pallas as pl
from jax.experimental.pallas import tpu as pltpu

INPUT_DIM = 29          # normal_train_fit_train.shape[1] in the original script
HIDDEN_LAYER1 = 30
ENCODING_DIM = 20
HIDDEN_LAYER2 = 25

PACK = 4                # batch rows packed into the lane axis
F_PAD = 32              # every feature dim padded up to 32
LANES = PACK * F_PAD    # 128 — one full vreg lane width
DEFAULT_PB = 256        # packed rows per tile (= 1024 original rows)

# (in_features, out_features) for each Linear, in forward order.
LAYER_DIMS = [
    (INPUT_DIM, HIDDEN_LAYER1),     # encoder Linear 1
    (HIDDEN_LAYER1, ENCODING_DIM),  # encoder Linear 2
    (ENCODING_DIM, HIDDEN_LAYER2),  # encoder Linear 3
    (HIDDEN_LAYER2, ENCODING_DIM),  # decoder Linear 1
    (ENCODING_DIM, HIDDEN_LAYER1),  # decoder Linear 2
]


def _round_up(x, m):
    return ((x + m - 1) // m) * m


def _choose_tile(packed_rows, pb_default=DEFAULT_PB):
    """Packed-row tile size: 8-aligned; >=2 tiles when there is enough work."""
    if packed_rows <= 8:
        return 8
    return min(pb_default, _round_up(pl.cdiv(packed_rows, 2), 8))


def autoencoder_kernel(x_ref,
                       w1_ref, b1_ref,
                       w2_ref, b2_ref,
                       w3_ref, b3_ref,
                       w4_ref, b4_ref,
                       w5_ref, b5_ref,
                       o_ref):
    """Fused 5x (Linear -> Sigmoid) on one lane-packed (PB, 128) batch tile.

    x/weights are bf16 (MXU inputs), accumulation and the sigmoid are f32.
    Weights/biases are VMEM-resident full blocks (constant index_map).
    """
    h = x_ref[...]                                   # bf16 (PB, 128)
    act = None
    for w_ref, b_ref in ((w1_ref, b1_ref), (w2_ref, b2_ref), (w3_ref, b3_ref),
                         (w4_ref, b4_ref), (w5_ref, b5_ref)):
        z = jnp.dot(h, w_ref[...],
                    preferred_element_type=jnp.float32) + b_ref[...]
        # sigmoid(z) = 0.5 * (1 + tanh(z / 2)) -> single EUP op per vreg.
        act = 0.5 * (1.0 + jnp.tanh(0.5 * z))        # f32
        h = act.astype(jnp.bfloat16)                 # next matmul input in bf16
    o_ref[...] = act.astype(o_ref.dtype)


def autoencoder_forward(x, params, pb=DEFAULT_PB):
    """x: (B, INPUT_DIM) f32. params: list of (W_T, b), W_T (in, out), b (1, out)."""
    batch, in_dim = x.shape
    assert in_dim == INPUT_DIM

    packed_rows = pl.cdiv(batch, PACK)
    pb = _choose_tile(packed_rows, pb)
    num_tiles = pl.cdiv(packed_rows, pb)
    if num_tiles > 1 and num_tiles % 2:
        num_tiles += 1          # even tile count balances v7x's 2 TensorCores
    padded_packed = num_tiles * pb
    padded_batch = padded_packed * PACK

    # Host-side pad: batch -> tile multiple, features 29 -> 32, then lane-pack
    # 4 rows per packed row: (padded_batch, 32) -> (padded_batch/4, 128).
    x_p = jnp.pad(x.astype(jnp.bfloat16),
                  ((0, padded_batch - batch), (0, F_PAD - in_dim)))
    x_packed = x_p.reshape(padded_packed, LANES)

    # Block-diagonal 128x128 weights (4 copies of each padded W) + tiled biases.
    eye4 = jnp.eye(PACK, dtype=jnp.float32)
    flat_args = [x_packed]
    for w_t, b in params:
        fan_in, fan_out = w_t.shape
        w_pad = jnp.zeros((F_PAD, F_PAD), jnp.float32)
        w_pad = w_pad.at[:fan_in, :fan_out].set(w_t.astype(jnp.float32))
        w_block = jnp.kron(eye4, w_pad).astype(jnp.bfloat16)       # (128, 128)
        b_pad = jnp.zeros((1, F_PAD), jnp.float32)
        b_pad = b_pad.at[:, :fan_out].set(jnp.asarray(b, jnp.float32).reshape(1, -1))
        b_tiled = jnp.tile(b_pad, (1, PACK))                       # (1, 128) f32
        flat_args += [w_block, b_tiled]

    in_specs = [pl.BlockSpec((pb, LANES), lambda i: (i, 0))]
    # Weights/biases: full blocks, constant index_map -> stay VMEM-resident.
    for a in flat_args[1:]:
        in_specs.append(pl.BlockSpec(a.shape, lambda i: (0, 0)))
    out_specs = pl.BlockSpec((pb, LANES), lambda i: (i, 0))        # lane-dense store

    out = pl.pallas_call(
        autoencoder_kernel,
        out_shape=jax.ShapeDtypeStruct((padded_packed, LANES), jnp.float32),
        grid_spec=pl.GridSpec(
            grid=(num_tiles,),
            in_specs=in_specs,
            out_specs=out_specs,
        ),
        compiler_params=pltpu.CompilerParams(
            dimension_semantics=("parallel",)),   # shard tiles across v7x's 2 TCs
    )(*flat_args)

    # Un-pack lanes -> rows, drop padded rows/columns.
    out = out.reshape(padded_batch, F_PAD)
    return out[:batch, :HIDDEN_LAYER1]


def init_params(key):
    """Deterministic init mimicking torch.nn.Linear default U(-1/sqrt(fan_in), +)."""
    params = []
    for fan_in, fan_out in LAYER_DIMS:
        key, kw, kb = jax.random.split(key, 3)
        bound = 1.0 / math.sqrt(fan_in)
        # Stored already transposed: (in_features, out_features).
        w_t = jax.random.uniform(kw, (fan_in, fan_out), jnp.float32, -bound, bound)
        b = jax.random.uniform(kb, (1, fan_out), jnp.float32, -bound, bound)
        params.append((w_t, b))
    return params


def reference_forward(x, params):
    h = x
    for w_t, b in params:
        h = jax.nn.sigmoid(h @ w_t + b)
    return h


if __name__ == "__main__":
    key = jax.random.PRNGKey(0)
    key, kx1, kx2 = jax.random.split(key, 3)
    params = init_params(key)

    # Small demo batch (single tile, lane-packed 8 rows -> 2 packed rows).
    batch = 8
    x = jax.random.normal(kx1, (batch, INPUT_DIM), jnp.float32)
    out = jax.block_until_ready(autoencoder_forward(x, params))
    ref = reference_forward(x, params)
    assert out.shape == (batch, HIDDEN_LAYER1)
    # Tolerance accounts for bf16 matmul inputs (f32 accumulation/sigmoid).
    assert jnp.allclose(out, ref, atol=2e-2, rtol=2e-2)

    # Non-multiple batch: exercises batch padding + 2-tile grid (megacore path).
    batch2 = 1000
    x2 = jax.random.normal(kx2, (batch2, INPUT_DIM), jnp.float32)
    out2 = jax.block_until_ready(autoencoder_forward(x2, params))
    ref2 = reference_forward(x2, params)
    assert out2.shape == (batch2, HIDDEN_LAYER1)
    assert jnp.allclose(out2, ref2, atol=2e-2, rtol=2e-2)

    print("KERNEL_OK")
</pallas_src>

<mosaic_0001>
module attributes {stable_mosaic.version = 11 : i64} {
  func.func @autoencoder_kernel(%arg0: i32, %arg1: memref<8x128xbf16, #tpu.memory_space<vmem>>, %arg2: memref<128x128xbf16, #tpu.memory_space<vmem>>, %arg3: memref<1x128xf32, #tpu.memory_space<vmem>>, %arg4: memref<128x128xbf16, #tpu.memory_space<vmem>>, %arg5: memref<1x128xf32, #tpu.memory_space<vmem>>, %arg6: memref<128x128xbf16, #tpu.memory_space<vmem>>, %arg7: memref<1x128xf32, #tpu.memory_space<vmem>>, %arg8: memref<128x128xbf16, #tpu.memory_space<vmem>>, %arg9: memref<1x128xf32, #tpu.memory_space<vmem>>, %arg10: memref<128x128xbf16, #tpu.memory_space<vmem>>, %arg11: memref<1x128xf32, #tpu.memory_space<vmem>>, %arg12: memref<8x128xf32, #tpu.memory_space<vmem>>) attributes {dimension_semantics = [#tpu.dimension_semantics<parallel>], iteration_bounds = array<i64: 1>, scalar_prefetch = 0 : i64, scratch_operands = 0 : i64, tpu.core_type = #tpu.core_type<tc>, window_params = [{transform_indices = @transform_0, window_bounds = array<i64: 8, 128>}, {pipeline_mode = #tpu.pipeline_mode<synchronous>, transform_indices = @transform_1, window_bounds = array<i64: 128, 128>}, {pipeline_mode = #tpu.pipeline_mode<synchronous>, transform_indices = @transform_2, window_bounds = array<i64: 1, 128>}, {pipeline_mode = #tpu.pipeline_mode<synchronous>, transform_indices = @transform_3, window_bounds = array<i64: 128, 128>}, {pipeline_mode = #tpu.pipeline_mode<synchronous>, transform_indices = @transform_4, window_bounds = array<i64: 1, 128>}, {pipeline_mode = #tpu.pipeline_mode<synchronous>, transform_indices = @transform_5, window_bounds = array<i64: 128, 128>}, {pipeline_mode = #tpu.pipeline_mode<synchronous>, transform_indices = @transform_6, window_bounds = array<i64: 1, 128>}, {pipeline_mode = #tpu.pipeline_mode<synchronous>, transform_indices = @transform_7, window_bounds = array<i64: 128, 128>}, {pipeline_mode = #tpu.pipeline_mode<synchronous>, transform_indices = @transform_8, window_bounds = array<i64: 1, 128>}, {pipeline_mode = #tpu.pipeline_mode<synchronous>, transform_indices = @transform_9, window_bounds = array<i64: 128, 128>}, {pipeline_mode = #tpu.pipeline_mode<synchronous>, transform_indices = @transform_10, window_bounds = array<i64: 1, 128>}, {transform_indices = @transform_11, window_bounds = array<i64: 8, 128>}]} {
    %c0 = arith.constant 0 : index
    %c0_0 = arith.constant 0 : index
    %0 = vector.load %arg1[%c0, %c0_0] : memref<8x128xbf16, #tpu.memory_space<vmem>>, vector<8x128xbf16>
    %c0_1 = arith.constant 0 : index
    %c0_2 = arith.constant 0 : index
    %1 = vector.load %arg2[%c0_1, %c0_2] : memref<128x128xbf16, #tpu.memory_space<vmem>>, vector<128x128xbf16>
    %cst = arith.constant dense<0.000000e+00> : vector<8x128xf32>
    %2 = tpu.matmul %0, %1, %cst {dimension_numbers = #tpu.dot_dimension_numbers<[1], [0], [0], [1], [0, 0, 1, 1], [], []>} : vector<8x128xbf16>, vector<128x128xbf16>, vector<8x128xf32> -> vector<8x128xf32>
    %c0_3 = arith.constant 0 : index
    %c0_4 = arith.constant 0 : index
    %3 = vector.load %arg3[%c0_3, %c0_4] : memref<1x128xf32, #tpu.memory_space<vmem>>, vector<1x128xf32>
    %4 = vector.broadcast %3 : vector<1x128xf32> to vector<8x128xf32>
    %5 = arith.addf %2, %4 : vector<8x128xf32>
    %cst_5 = arith.constant 5.000000e-01 : f32
    %6 = vector.broadcast %cst_5 : f32 to vector<8x128xf32>
    %7 = arith.mulf %6, %5 : vector<8x128xf32>
    %8 = math.tanh %7 : vector<8x128xf32>
    %cst_6 = arith.constant 1.000000e+00 : f32
    %9 = vector.broadcast %cst_6 : f32 to vector<8x128xf32>
    %10 = arith.addf %9, %8 : vector<8x128xf32>
    %cst_7 = arith.constant 5.000000e-01 : f32
    %11 = vector.broadcast %cst_7 : f32 to vector<8x128xf32>
    %12 = arith.mulf %11, %10 : vector<8x128xf32>
    %13 = arith.truncf %12 : vector<8x128xf32> to vector<8x128xbf16>
    %c0_8 = arith.constant 0 : index
    %c0_9 = arith.constant 0 : index
    %14 = vector.load %arg4[%c0_8, %c0_9] : memref<128x128xbf16, #tpu.memory_space<vmem>>, vector<128x128xbf16>
    %cst_10 = arith.constant dense<0.000000e+00> : vector<8x128xf32>
    %15 = tpu.matmul %13, %14, %cst_10 {dimension_numbers = #tpu.dot_dimension_numbers<[1], [0], [0], [1], [0, 0, 1, 1], [], []>} : vector<8x128xbf16>, vector<128x128xbf16>, vector<8x128xf32> -> vector<8x128xf32>
    %c0_11 = arith.constant 0 : index
    %c0_12 = arith.constant 0 : index
    %16 = vector.load %arg5[%c0_11, %c0_12] : memref<1x128xf32, #tpu.memory_space<vmem>>, vector<1x128xf32>
    %17 = vector.broadcast %16 : vector<1x128xf32> to vector<8x128xf32>
    %18 = arith.addf %15, %17 : vector<8x128xf32>
    %cst_13 = arith.constant 5.000000e-01 : f32
    %19 = vector.broadcast %cst_13 : f32 to vector<8x128xf32>
    %20 = arith.mulf %19, %18 : vector<8x128xf32>
    %21 = math.tanh %20 : vector<8x128xf32>
    %cst_14 = arith.constant 1.000000e+00 : f32
    %22 = vector.broadcast %cst_14 : f32 to vector<8x128xf32>
    %23 = arith.addf %22, %21 : vector<8x128xf32>
    %cst_15 = arith.constant 5.000000e-01 : f32
    %24 = vector.broadcast %cst_15 : f32 to vector<8x128xf32>
    %25 = arith.mulf %24, %23 : vector<8x128xf32>
    %26 = arith.truncf %25 : vector<8x128xf32> to vector<8x128xbf16>
    %c0_16 = arith.constant 0 : index
    %c0_17 = arith.constant 0 : index
    %27 = vector.load %arg6[%c0_16, %c0_17] : memref<128x128xbf16, #tpu.memory_space<vmem>>, vector<128x128xbf16>
    %cst_18 = arith.constant dense<0.000000e+00> : vector<8x128xf32>
    %28 = tpu.matmul %26, %27, %cst_18 {dimension_numbers = #tpu.dot_dimension_numbers<[1], [0], [0], [1], [0, 0, 1, 1], [], []>} : vector<8x128xbf16>, vector<128x128xbf16>, vector<8x128xf32> -> vector<8x128xf32>
    %c0_19 = arith.constant 0 : index
    %c0_20 = arith.constant 0 : index
    %29 = vector.load %arg7[%c0_19, %c0_20] : memref<1x128xf32, #tpu.memory_space<vmem>>, vector<1x128xf32>
    %30 = vector.broadcast %29 : vector<1x128xf32> to vector<8x128xf32>
    %31 = arith.addf %28, %30 : vector<8x128xf32>
    %cst_21 = arith.constant 5.000000e-01 : f32
    %32 = vector.broadcast %cst_21 : f32 to vector<8x128xf32>
    %33 = arith.mulf %32, %31 : vector<8x128xf32>
    %34 = math.tanh %33 : vector<8x128xf32>
    %cst_22 = arith.constant 1.000000e+00 : f32
    %35 = vector.broadcast %cst_22 : f32 to vector<8x128xf32>
    %36 = arith.addf %35, %34 : vector<8x128xf32>
    %cst_23 = arith.constant 5.000000e-01 : f32
    %37 = vector.broadcast %cst_23 : f32 to vector<8x128xf32>
    %38 = arith.mulf %37, %36 : vector<8x128xf32>
    %39 = arith.truncf %38 : vector<8x128xf32> to vector<8x128xbf16>
    %c0_24 = arith.constant 0 : index
    %c0_25 = arith.constant 0 : index
    %40 = vector.load %arg8[%c0_24, %c0_25] : memref<128x128xbf16, #tpu.memory_space<vmem>>, vector<128x128xbf16>
    %cst_26 = arith.constant dense<0.000000e+00> : vector<8x128xf32>
    %41 = tpu.matmul %39, %40, %cst_26 {dimension_numbers = #tpu.dot_dimension_numbers<[1], [0], [0], [1], [0, 0, 1, 1], [], []>} : vector<8x128xbf16>, vector<128x128xbf16>, vector<8x128xf32> -> vector<8x128xf32>
    %c0_27 = arith.constant 0 : index
    %c0_28 = arith.constant 0 : index
    %42 = vector.load %arg9[%c0_27, %c0_28] : memref<1x128xf32, #tpu.memory_space<vmem>>, vector<1x128xf32>
    %43 = vector.broadcast %42 : vector<1x128xf32> to vector<8x128xf32>
    %44 = arith.addf %41, %43 : vector<8x128xf32>
    %cst_29 = arith.constant 5.000000e-01 : f32
    %45 = vector.broadcast %cst_29 : f32 to vector<8x128xf32>
    %46 = arith.mulf %45, %44 : vector<8x128xf32>
    %47 = math.tanh %46 : vector<8x128xf32>
    %cst_30 = arith.constant 1.000000e+00 : f32
    %48 = vector.broadcast %cst_30 : f32 to vector<8x128xf32>
    %49 = arith.addf %48, %47 : vector<8x128xf32>
    %cst_31 = arith.constant 5.000000e-01 : f32
    %50 = vector.broadcast %cst_31 : f32 to vector<8x128xf32>
    %51 = arith.mulf %50, %49 : vector<8x128xf32>
    %52 = arith.truncf %51 : vector<8x128xf32> to vector<8x128xbf16>
    %c0_32 = arith.constant 0 : index
    %c0_33 = arith.constant 0 : index
    %53 = vector.load %arg10[%c0_32, %c0_33] : memref<128x128xbf16, #tpu.memory_space<vmem>>, vector<128x128xbf16>
    %cst_34 = arith.constant dense<0.000000e+00> : vector<8x128xf32>
    %54 = tpu.matmul %52, %53, %cst_34 {dimension_numbers = #tpu.dot_dimension_numbers<[1], [0], [0], [1], [0, 0, 1, 1], [], []>} : vector<8x128xbf16>, vector<128x128xbf16>, vector<8x128xf32> -> vector<8x128xf32>
    %c0_35 = arith.constant 0 : index
    %c0_36 = arith.constant 0 : index
    %55 = vector.load %arg11[%c0_35, %c0_36] : memref<1x128xf32, #tpu.memory_space<vmem>>, vector<1x128xf32>
    %56 = vector.broadcast %55 : vector<1x128xf32> to vector<8x128xf32>
    %57 = arith.addf %54, %56 : vector<8x128xf32>
    %cst_37 = arith.constant 5.000000e-01 : f32
    %58 = vector.broadcast %cst_37 : f32 to vector<8x128xf32>
    %59 = arith.mulf %58, %57 : vector<8x128xf32>
    %60 = math.tanh %59 : vector<8x128xf32>
    %cst_38 = arith.constant 1.000000e+00 : f32
    %61 = vector.broadcast %cst_38 : f32 to vector<8x128xf32>
    %62 = arith.addf %61, %60 : vector<8x128xf32>
    %cst_39 = arith.constant 5.000000e-01 : f32
    %63 = vector.broadcast %cst_39 : f32 to vector<8x128xf32>
    %64 = arith.mulf %63, %62 : vector<8x128xf32>
    %c0_40 = arith.constant 0 : index
    %c0_41 = arith.constant 0 : index
    %65 = vector.load %arg12[%c0_40, %c0_41] : memref<8x128xf32, #tpu.memory_space<vmem>>, vector<8x128xf32>
    tpu.vector_store %arg12[%c0_40, %c0_41], %64 {strides = array<i32>} : memref<8x128xf32, #tpu.memory_space<vmem>>, vector<8x128xf32>,
    return
  }
  func.func @transform_0(%arg0: i32) -> (i32, i32) {
    %c0_i32 = arith.constant 0 : i32
    %c0_i32_0 = arith.constant 0 : i32
    return %arg0, %c0_i32 : i32, i32
  }
  func.func @transform_1(%arg0: i32) -> (i32, i32) {
    %c0_i32 = arith.constant 0 : i32
    %c0_i32_0 = arith.constant 0 : i32
    %c0_i32_1 = arith.constant 0 : i32
    return %c0_i32, %c0_i32_0 : i32, i32
  }
  func.func @transform_2(%arg0: i32) -> (i32, i32) {
    %c0_i32 = arith.constant 0 : i32
    %c0_i32_0 = arith.constant 0 : i32
    %c0_i32_1 = arith.constant 0 : i32
    return %c0_i32, %c0_i32_0 : i32, i32
  }
  func.func @transform_3(%arg0: i32) -> (i32, i32) {
    %c0_i32 = arith.constant 0 : i32
    %c0_i32_0 = arith.constant 0 : i32
    %c0_i32_1 = arith.constant 0 : i32
    return %c0_i32, %c0_i32_0 : i32, i32
  }
  func.func @transform_4(%arg0: i32) -> (i32, i32) {
    %c0_i32 = arith.constant 0 : i32
    %c0_i32_0 = arith.constant 0 : i32
    %c0_i32_1 = arith.constant 0 : i32
    return %c0_i32, %c0_i32_0 : i32, i32
  }
  func.func @transform_5(%arg0: i32) -> (i32, i32) {
    %c0_i32 = arith.constant 0 : i32
    %c0_i32_0 = arith.constant 0 : i32
    %c0_i32_1 = arith.constant 0 : i32
    return %c0_i32, %c0_i32_0 : i32, i32
  }
  func.func @transform_6(%arg0: i32) -> (i32, i32) {
    %c0_i32 = arith.constant 0 : i32
    %c0_i32_0 = arith.constant 0 : i32
    %c0_i32_1 = arith.constant 0 : i32
    return %c0_i32, %c0_i32_0 : i32, i32
  }
  func.func @transform_7(%arg0: i32) -> (i32, i32) {
    %c0_i32 = arith.constant 0 : i32
    %c0_i32_0 = arith.constant 0 : i32
    %c0_i32_1 = arith.constant 0 : i32
    return %c0_i32, %c0_i32_0 : i32, i32
  }
  func.func @transform_8(%arg0: i32) -> (i32, i32) {
    %c0_i32 = arith.constant 0 : i32
    %c0_i32_0 = arith.constant 0 : i32
    %c0_i32_1 = arith.constant 0 : i32
    return %c0_i32, %c0_i32_0 : i32, i32
  }
  func.func @transform_9(%arg0: i32) -> (i32, i32) {
    %c0_i32 = arith.constant 0 : i32
    %c0_i32_0 = arith.constant 0 : i32
    %c0_i32_1 = arith.constant 0 : i32
    return %c0_i32, %c0_i32_0 : i32, i32
  }
  func.func @transform_10(%arg0: i32) -> (i32, i32) {
    %c0_i32 = arith.constant 0 : i32
    %c0_i32_0 = arith.constant 0 : i32
    %c0_i32_1 = arith.constant 0 : i32
    return %c0_i32, %c0_i32_0 : i32, i32
  }
  func.func @transform_11(%arg0: i32) -> (i32, i32) {
    %c0_i32 = arith.constant 0 : i32
    %c0_i32_0 = arith.constant 0 : i32
    return %arg0, %c0_i32 : i32, i32
  }
}

</mosaic_0001>

<bundles_post_ra>
// kernel: tpu_custom_call.1
= control target key start
LH: loop header
LB: loop body
LE: loop exit
PB: predicated region body
PF: predicated region fallthrough
CT: control target
= control target key end

     0   :  { %16 = vsyncpa [#allocation3], 0  ;;  %s1104_s0 = inlined_call_operand.hbm [shape: bf16[8,128], index: 0, kind: input, shape index: {}]   ;;  %s1105_s1 = inlined_call_operand.hbm [shape: bf16[128,128], index: 1, kind: input, shape index: {}]   ;;  %s1106_s2 = inlined_call_operand.vmem [shape: f32[1,128], index: 2, kind: input, shape index: {}]   ;;  %s1107_s3 = inlined_call_operand.hbm [shape: bf16[128,128], index: 3, kind: input, shape index: {}]   ;;  %s1108_s4 = inlined_call_operand.vmem [shape: f32[1,128], index: 4, kind: input, shape index: {}]   ;;  %s1109_s5 = inlined_call_operand.hbm [shape: bf16[128,128], index: 5, kind: input, shape index: {}]   ;;  %s1110_s6 = inlined_call_operand.vmem [shape: f32[1,128], index: 6, kind: input, shape index: {}]   ;;  %s1111_s7 = inlined_call_operand.hbm [shape: bf16[128,128], index: 7, kind: input, shape index: {}]   ;;  %s1112_s8 = inlined_call_operand.vmem [shape: f32[1,128], index: 8, kind: input, shape index: {}]   ;;  %s1113_s9 = inlined_call_operand.hbm [shape: bf16[128,128], index: 9, kind: input, shape index: {}]   ;;  %s1114_s10 = inlined_call_operand.vmem [shape: f32[1,128], index: 10, kind: input, shape index: {}]   ;;  %s1115_s11 = inlined_call_operand.hbm [shape: f32[8,128], index: 11, kind: output, shape index: {}]  }
   0x1   :  { %17 = vsyncpa [#allocation6], 0 }
   0x2   :  { %18 = vsyncpa [#allocation9], 0 }
   0x3   :  { %19 = vsyncpa [#allocation12], 0  ;;  %s36_s19 = sshll.u32 %s1105_s1, 4  ;;  %s37_s19 = int_to_ptr.hbm [resolvable:$true] %s36_s19 }
   0x4   :  { %20 = vsyncpa [#allocation4], 0  ;;  %s984_s20 = smov [#allocation5]   ;;  %s66_s24 = sshll.u32 %s1109_s5, 4  ;;  %s67_s24 = int_to_ptr.hbm [resolvable:$true] %s66_s24 }
   0x5   :  { %s38_s21 = sshll.u32 %s984_s20, 4  ;;  %s985_s25 = smov 64   ;;  %s39_s21 = int_to_ptr.vmem [resolvable:$true] %s38_s21 }
   0x6   :  { %s986_s26 = smov 4   ;;  %s987_s27 = smov [#allocation8]  }
   0x7   :  { %44 = dma.hbm_to_vmem [thread:$0]  %s37_s19, 1024, %s39_s21, [#allocation6], %s985_s25, %s985_s25, %s986_s26  }
   0x8   :  { %s68_s28 = sshll.u32 %s987_s27, 4  ;;  %s26_s30 = sshll.u32 %s1104_s0, 4  ;;  %s69_s28 = int_to_ptr.vmem [resolvable:$true] %s68_s28  ;;  %s27_s30 = int_to_ptr.hbm [resolvable:$true] %s26_s30 }
   0x9   :  { %74 = dma.hbm_to_vmem [thread:$0]  %s67_s24, 1024, %s69_s28, [#allocation9], %s985_s25, %s985_s25, %s986_s26  }
   0xa   :  { %s51_s13 = sshll.u32 %s1107_s3, 4  ;;  %s988_s14 = smov [#allocation2]   ;;  %s52_s13 = int_to_ptr.hbm [resolvable:$true] %s51_s13 }
   0xb   :  { %s28_s15 = sshll.u32 %s988_s14, 4  ;;  %s989_s16 = smov [#allocation7]   ;;  %s29_s15 = int_to_ptr.vmem [resolvable:$true] %s28_s15 }
   0xc   :  { %31 = dma.hbm_to_vmem [thread:$0]  %s27_s30, 64, %s29_s15, [#allocation3]  }
   0xd   :  { %s53_s17 = sshll.u32 %s989_s16, 4  ;;  %s81_s0 = sshll.u32 %s1111_s7, 4  ;;  %s54_s17 = int_to_ptr.vmem [resolvable:$true] %s53_s17  ;;  %s82_s0 = int_to_ptr.hbm [resolvable:$true] %s81_s0 }
   0xe   :  { %59 = dma.hbm_to_vmem [thread:$0]  %s52_s13, 1024, %s54_s17, [#allocation6], %s985_s25, %s985_s25, %s986_s26  }
   0xf   :  { %s96_s3 = sshll.u32 %s1113_s9, 4  ;;  %s990_s22 = smov [#allocation10]   ;;  %s97_s3 = int_to_ptr.hbm [resolvable:$true] %s96_s3 }
  0x10   :  { %s83_s23 = sshll.u32 %s990_s22, 4  ;;  %s991_s24 = smov [#allocation11]   ;;  %s84_s23 = int_to_ptr.vmem [resolvable:$true] %s83_s23 }
  0x11   :  { %89 = dma.hbm_to_vmem [thread:$0]  %s82_s0, 1024, %s84_s23, [#allocation9], %s985_s25, %s985_s25, %s986_s26  }
  0x12   :  { %s98_s7 = sshll.u32 %s991_s24, 4  ;;  %s99_s7 = int_to_ptr.vmem [resolvable:$true] %s98_s7 }
  0x13   :  { %104 = dma.hbm_to_vmem [thread:$0]  %s97_s3, 1024, %s99_s7, [#allocation12], %s985_s25, %s985_s25, %s986_s26  }
  0x14   :  { %974 = dma.done.wait [#allocation3], 64  }
  0x15   :  { %975 = vsyncadd [#allocation3], 4294967232 }
  0x16   :  { %976 = dma.done.wait [#allocation6], 2048  }
  0x17   :  { %977 = vsyncadd [#allocation6], 4294965248 }
  0x18   :  { %978 = dma.done.wait [#allocation9], 2048  }
  0x19   :  { %979 = vsyncadd [#allocation9], 4294965248 }
  0x1a   :  { %980 = dma.done.wait [#allocation12], 1024  }
  0x1b   :  { %981 = vsyncadd [#allocation12], 4294966272  ;;  %v749_v0 = vld [vmem:[#allocation5 + $0x38] sm:$0xff]  ;;  %v748_v1 = vld [vmem:[#allocation5 + $0x30] sm:$0xff]  ;;  %s569_s13 = sshll.u32 %s1115_s11, 4  ;;  %s570_s13 = int_to_ptr.hbm [resolvable:$true] %s569_s13 }
  0x1c   :  { %200 = vmatpush.bf16.msra.mxu0 %v749_v0  ;;  %v757_v2 = vld [vmem:[#allocation7 + $0x38] sm:$0xff]  ;;  %v756_v3 = vld [vmem:[#allocation7 + $0x30] sm:$0xff]  ;;  %v747_v4 = vld [vmem:[#allocation5 + $0x28] sm:$0xff] }
  0x1d   :  { %286 = vmatpush.bf16.msra.mxu1 %v757_v2  ;;  %v755_v5 = vld [vmem:[#allocation7 + $0x28] sm:$0xff]  ;;  %v746_v6 = vld [vmem:[#allocation5 + $0x20] sm:$0xff]  ;;  %v745_v8 = vld [vmem:[#allocation5 + $0x18] sm:$0xff] }
  0x1e   :  { %v754_v7 = vld [vmem:[#allocation7 + $0x20] sm:$0xff]  ;;  %v744_v9 = vld [vmem:[#allocation5 + $0x10] sm:$0xff]  ;;  %v743_v10 = vld [vmem:[#allocation5 + $0x8] sm:$0xff] }
  0x1f   :  { %v742_v11 = vld [vmem:[#allocation5] sm:$0xff]  ;;  %v131_v12 = vld [vmem:[#allocation2] sm:$0xf]  ;;  %v752_v14 = vld [vmem:[#allocation7 + $0x10] sm:$0xff] }
  0x20   :  { %201 = vmatpush.bf16.msra.mxu0 %v748_v1  ;;  %v753_v13 = vld [vmem:[#allocation7 + $0x18] sm:$0xff]  ;;  %v751_v15 = vld [vmem:[#allocation7 + $0x8] sm:$0xff]  ;;  %v750_v16 = vld [vmem:[#allocation7] sm:$0xff] }
  0x21   :  { %287 = vmatpush.bf16.msra.mxu1 %v756_v3  ;;  %v765_v17 = vld [vmem:[#allocation8 + $0x38] sm:$0xff]  ;;  %v764_v18 = vld [vmem:[#allocation8 + $0x30] sm:$0xff]  ;;  %v763_v19 = vld [vmem:[#allocation8 + $0x28] sm:$0xff] }
  0x22   :  { %372 = vmatpush.bf16.msra.mxu2 %v765_v17  ;;  %v762_v20 = vld [vmem:[#allocation8 + $0x20] sm:$0xff]  ;;  %v791_v21 = vld [vmem:[%s1106_s2] ss:$0 sm:$0xff]  ;;  %v760_v31 = vld [vmem:[#allocation8 + $0x10] sm:$0xff] }
  0x23   :  { %v761_v30 = vld [vmem:[#allocation8 + $0x18] sm:$0xff]  ;;  %v759_v32 = vld [vmem:[#allocation8 + $0x8] sm:$0xff]  ;;  %v758_v33 = vld [vmem:[#allocation8] sm:$0xff] }
  0x24   :  { %202 = vmatpush.bf16.msra.mxu0 %v747_v4  ;;  %v773_v34 = vld [vmem:[#allocation10 + $0x38] sm:$0xff]  ;;  %v772_v35 = vld [vmem:[#allocation10 + $0x30] sm:$0xff]  ;;  %v771_v36 = vld [vmem:[#allocation10 + $0x28] sm:$0xff] }
  0x25   :  { %288 = vmatpush.bf16.msra.mxu1 %v755_v5  ;;  %458 = vmatpush.bf16.msra.mxu3 %v773_v34  ;;  %v770_v37 = vld [vmem:[#allocation10 + $0x20] sm:$0xff]  ;;  %v792_v38 = vld [vmem:[%s1108_s4] ss:$0 sm:$0xff]  ;;  %v768_v48 = vld [vmem:[#allocation10 + $0x10] sm:$0xff] }
  0x26   :  { %373 = vmatpush.bf16.msra.mxu2 %v764_v18  ;;  %v769_v47 = vld [vmem:[#allocation10 + $0x18] sm:$0xff]  ;;  %v767_v49 = vld [vmem:[#allocation10 + $0x8] sm:$0xff]  ;;  %v766_v50 = vld [vmem:[#allocation10] sm:$0xff] }
  0x27   :  { %v781_v51 = vld [vmem:[#allocation11 + $0x38] sm:$0xff]  ;;  %v780_v52 = vld [vmem:[#allocation11 + $0x30] sm:$0xff]  ;;  %v779_v53 = vld [vmem:[#allocation11 + $0x28] sm:$0xff] }
  0x28   :  { %203 = vmatpush.bf16.msra.mxu0 %v746_v6  ;;  %v778_v54 = vld [vmem:[#allocation11 + $0x20] sm:$0xff]  ;;  %v793_v55 = vld [vmem:[%s1110_s6] ss:$0 sm:$0xff]  ;;  %v776_v1 = vld [vmem:[#allocation11 + $0x10] sm:$0xff] }
  0x29   :  { %289 = vmatpush.bf16.msra.mxu1 %v754_v7  ;;  %459 = vmatpush.bf16.msra.mxu3 %v772_v35  ;;  %v777_v0 = vld [vmem:[#allocation11 + $0x18] sm:$0xff]  ;;  %v775_v2 = vld [vmem:[#allocation11 + $0x8] sm:$0xff]  ;;  %v774_v3 = vld [vmem:[#allocation11] sm:$0xff] }
  0x2a   :  { %374 = vmatpush.bf16.msra.mxu2 %v763_v19  ;;  %v794_v4 = vld [vmem:[%s1112_s8] ss:$0 sm:$0xff]  ;;  %s992_s8 = smov [#allocation13]  }
  0x2b   :  { %s567_s30 = sshll.u32 %s992_s8, 4  ;;  %s568_s30 = int_to_ptr.vmem [resolvable:$true] %s567_s30 }
  0x2c   :  { %204 = vmatpush.bf16.msra.mxu0 %v745_v8 }
  0x2d   :  { %290 = vmatpush.bf16.msra.mxu1 %v753_v13  ;;  %460 = vmatpush.bf16.msra.mxu3 %v771_v36  ;;  %v795_v13 = vld [vmem:[%s1114_s10] ss:$0 sm:$0xff] }
  0x2e   :  { %375 = vmatpush.bf16.msra.mxu2 %v762_v20 }
  0x30   :  { %205 = vmatpush.bf16.msra.mxu0 %v744_v9 }
  0x31   :  { %291 = vmatpush.bf16.msra.mxu1 %v752_v14  ;;  %461 = vmatpush.bf16.msra.mxu3 %v770_v37 }
  0x32   :  { %376 = vmatpush.bf16.msra.mxu2 %v761_v30 }
  0x34   :  { %206 = vmatpush.bf16.msra.mxu0 %v743_v10 }
  0x35   :  { %292 = vmatpush.bf16.msra.mxu1 %v751_v15  ;;  %462 = vmatpush.bf16.msra.mxu3 %v769_v47 }
  0x36   :  { %377 = vmatpush.bf16.msra.mxu2 %v760_v31 }
  0x38   :  { %207 = vmatpush.bf16.msra.mxu0 %v742_v11 }
  0x39   :  { %293 = vmatpush.bf16.msra.mxu1 %v750_v16  ;;  %463 = vmatpush.bf16.msra.mxu3 %v768_v48 }
  0x3a   :  { %378 = vmatpush.bf16.msra.mxu2 %v759_v32 }
  0x3b   :  { %208 = vmatmul.bf16.vlgmr.msra.gmra.mxu0 %v131_v12 }
  0x3c   :  { %544 = vmatpush.bf16.msrb.mxu0 %v781_v51 }
  0x3d   :  { %464 = vmatpush.bf16.msra.mxu3 %v767_v49 }
  0x3e   :  { %379 = vmatpush.bf16.msra.mxu2 %v758_v33 }
  0x40   :  { %545 = vmatpush.bf16.msrb.mxu0 %v780_v52 }
  0x41   :  { %465 = vmatpush.bf16.msra.mxu3 %v766_v50 }
  0x44   :  { %546 = vmatpush.bf16.msrb.mxu0 %v779_v53 }
  0x48   :  { %547 = vmatpush.bf16.msrb.mxu0 %v778_v54 }
  0x4c   :  { %548 = vmatpush.bf16.msrb.mxu0 %v777_v0 }
  0x50   :  { %549 = vmatpush.bf16.msrb.mxu0 %v776_v1 }
  0x54   :  { %550 = vmatpush.bf16.msrb.mxu0 %v775_v2 }
  0x58   :  { %551 = vmatpush.bf16.msrb.mxu0 %v774_v3 }
  0xb8   :  { %v209_v22 = vpop.f32.mrf.mxu0 }
  0xb9   :  { %v210_v23 = vadd.f32 %v791_v21, %v209_v22 }
  0xbb   :  { %v213_v24 = vmul.f32 0.5, %v210_v23 }
  0xbd   :  { %796 = vtanh.f32 %v213_v24 }
  0xc0   :  { %v211_v25 = vpop.f32.mrf.mxu0 }
  0xc3   :  { %v797_v26 = vpop.eup %796 }
  0xc4   :  { %v215_v27 = vadd.f32 1.0, %v797_v26 }
  0xc6   :  { %v216_v28 = vmul.f32 0.5, %v215_v27 }
  0xc8   :  { %v217_v29 = vpack.c.bf16 %v216_v28, %v216_v28 }
  0xca   :  { %294 = vmatmul.bf16.vlgmr.msra.gmra.mxu1 %v217_v29 }
 0x147   :  { %v295_v39 = vpop.f32.mrf.mxu1 }
 0x148   :  { %v296_v40 = vadd.f32 %v792_v38, %v295_v39 }
 0x14a   :  { %v299_v41 = vmul.f32 0.5, %v296_v40 }
 0x14c   :  { %798 = vtanh.f32 %v299_v41 }
 0x14f   :  { %v297_v42 = vpop.f32.mrf.mxu1 }
 0x152   :  { %v799_v43 = vpop.eup %798 }
 0x153   :  { %v301_v44 = vadd.f32 1.0, %v799_v43 }
 0x155   :  { %v302_v45 = vmul.f32 0.5, %v301_v44 }
 0x157   :  { %v303_v46 = vpack.c.bf16 %v302_v45, %v302_v45 }
 0x159   :  { %380 = vmatmul.bf16.vlgmr.msra.gmra.mxu2 %v303_v46 }
 0x1dc   :  { %v381_v56 = vpop.f32.mrf.mxu2 }
 0x1dd   :  { %v382_v57 = vadd.f32 %v793_v55, %v381_v56 }
 0x1df   :  { %v385_v58 = vmul.f32 0.5, %v382_v57 }
 0x1e1   :  { %800 = vtanh.f32 %v385_v58 }
 0x1e4   :  { %v383_v59 = vpop.f32.mrf.mxu2 }
 0x1e7   :  { %v801_v60 = vpop.eup %800 }
 0x1e8   :  { %v387_v61 = vadd.f32 1.0, %v801_v60 }
 0x1ea   :  { %v388_v62 = vmul.f32 0.5, %v387_v61 }
 0x1ec   :  { %v389_v63 = vpack.c.bf16 %v388_v62, %v388_v62 }
 0x1ee   :  { %466 = vmatmul.bf16.vlgmr.msra.gmra.mxu3 %v389_v63 }
 0x271   :  { %v467_v5 = vpop.f32.mrf.mxu3 }
 0x272   :  { %v468_v6 = vadd.f32 %v794_v4, %v467_v5 }
 0x274   :  { %v471_v7 = vmul.f32 0.5, %v468_v6 }
 0x276   :  { %802 = vtanh.f32 %v471_v7 }
 0x279   :  { %v469_v8 = vpop.f32.mrf.mxu3 }
 0x27c   :  { %v803_v9 = vpop.eup %802 }
 0x27d   :  { %v473_v10 = vadd.f32 1.0, %v803_v9 }
 0x27f   :  { %v474_v11 = vmul.f32 0.5, %v473_v10 }
 0x281   :  { %v475_v12 = vpack.c.bf16 %v474_v11, %v474_v11 }
 0x283   :  { %552 = vmatmul.bf16.vlgmr.msrb.gmra.mxu0 %v475_v12 }
 0x300   :  { %v553_v14 = vpop.f32.mrf.mxu0 }
 0x301   :  { %v554_v15 = vadd.f32 %v795_v13, %v553_v14 }
 0x303   :  { %v557_v16 = vmul.f32 0.5, %v554_v15 }
 0x305   :  { %804 = vtanh.f32 %v557_v16 }
 0x308   :  { %v555_v17 = vpop.f32.mrf.mxu0 }
 0x30b   :  { %v805_v18 = vpop.eup %804 }
 0x30c   :  { %v559_v19 = vadd.f32 1.0, %v805_v18 }
 0x30e   :  { %v560_v20 = vmul.f32 0.5, %v559_v19 }
 0x310   :  { %561 = vst [vmem:[#allocation13] sm:$0xff] %v560_v20 }
 0x311   :  { %572 = dma.vmem_to_hbm [thread:$0]  %s568_s30, 128, %s570_s13, [#allocation4]  }
 0x312   :  { %982 = dma.done.wait [#allocation4], 128  }
 0x313   :  { %983 = vsyncadd [#allocation4], 4294967168 }
 0x314   :  { %577 = vsyncpa [#allocation3], 1 }
 0x315   :  { %578 = vsyncpa [#allocation6], 1 }
 0x316   :  { %579 = vsyncpa [#allocation9], 1 }
 0x317   :  { %580 = vsyncpa [#allocation12], 1 }
 0x318   :  { %581 = vsyncpa [#allocation4], 1 }

</bundles_post_ra>
